<compile_context>
chip_gen: v7x
topology: tpu7x:2x2x1
jax: 0.10.0
libtpu: 0.0.40
codegen_flags: <defaults>
</compile_context>

<pallas_src>
import functools

import jax
import jax.numpy as jnp
from jax import lax
from jax.experimental import pallas as pl
from jax.experimental.pallas import tpu as pltpu

TEMPERATURE = 0.07
BASE_TEMPERATURE = None   # module default -> base_temperature = temperature
_EPS = 1e-8               # nn.CosineSimilarity default eps (clamp on the norm)
_SUB = 16                 # sublane multiple safe for both bf16 and f32 blocks


def _round_up(x, m):
    return (x + m - 1) // m * m


def _vmem_capacity_bytes():
    try:
        return int(pltpu.get_tpu_info().vmem_capacity_bytes)
    except Exception:
        return 64 * 1024 * 1024   # conservative fallback (v7x per-TC VMEM)


def _pick_tiles(B, H_pad, itemsize):
    """Per-generation tile choice + vmem budget, sized off the real VMEM."""
    vmem_cap = _vmem_capacity_bytes()
    budget = int(vmem_cap * 0.70)          # headroom for Mosaic internal scratch

    def vmem_need(tm, tk):
        inputs = 2 * (tm + tk) * H_pad * itemsize       # double-buffered blocks
        inter = 6 * tm * tk * 4                          # (tm,tk) f32 temporaries
        out = 2 * tm * 128 * 4                           # lane-dense output block
        scratch = 4 * tm * 4 + 2 * (tm + tk) * 4
        return inputs + inter + out + scratch

    B16 = _round_up(B, _SUB)
    if B16 <= 256:
        # Single contrast-column tile; split rows in two so the "parallel" axis
        # has >=2 tiles and both v7x TensorCores stay busy.
        TK = max(_SUB, pl.next_power_of_2(B16))
        TM = max(_SUB, TK // 2)
    else:
        TK = 256
        B_pad = _round_up(B, TK)
        TM = 256
        # Largest anchor-row tile (raises FLOPs/byte on the contrast stream)
        # that divides B_pad and fits the VMEM budget.
        for cand in (512, 256, 128, 64, 32, 16):
            if B_pad % cand == 0 and vmem_need(cand, TK) <= budget:
                TM = cand
                break
    while TM > _SUB and vmem_need(TM, TK) > budget:
        TM //= 2

    vmem_limit = int(min(max(2 * vmem_need(TM, TK), 32 * 1024 * 1024),
                         vmem_cap * 0.85))
    return TM, TK, vmem_limit


def _supcon_kernel(a_ref, c_ref, lab_r_ref, lab_c_ref, out_ref,
                   m_sc, d_sc, p_sc, n_sc,
                   *, tm, tk, n_valid, b_pad, loss_scale):
    i = pl.program_id(0)   # anchor-row tile   ("parallel", megacore-shardable)
    k = pl.program_id(1)   # contrast-col tile ("arbitrary", reduction)

    @pl.when(k == 0)
    def _():
        m_sc[...] = jnp.full((tm, 1), -jnp.inf, jnp.float32)
        d_sc[...] = jnp.zeros((tm, 1), jnp.float32)
        p_sc[...] = jnp.zeros((tm, 1), jnp.float32)
        n_sc[...] = jnp.zeros((tm, 1), jnp.float32)

    # MXU: contract the hidden axis directly (no transpose).  Anchors were
    # L2-normalized AND pre-scaled by 1/temperature in the wrapper; contrasts
    # are L2-normalized.  No per-step renormalization / rescale.
    s = lax.dot_general(a_ref[...], c_ref[...], (((1,), (1,)), ((), ())),
                        preferred_element_type=jnp.float32)          # (tm, tk)

    # Running row max over the raw logits.  It cancels exactly in the final
    # log-prob, so including the diagonal / padded columns is harmless (and is
    # what the torch reference does for the max anyway).
    m_prev = m_sc[...]
    m_new = jnp.maximum(m_prev, jnp.max(s, axis=1, keepdims=True))
    alpha = jnp.exp(m_prev - m_new)
    e = jnp.exp(s - m_new)
    d_scaled = d_sc[...] * alpha
    pos_eq = lab_r_ref[...] == lab_c_ref[...]                        # (tm, tk)
    m_sc[...] = m_new

    row_start = i * tm
    col_start = k * tk
    touches_diag = jnp.logical_and(row_start < col_start + tk,
                                   col_start < row_start + tm)
    if b_pad > n_valid:
        needs_mask = jnp.logical_or(touches_diag,
                                    k == pl.num_programs(1) - 1)
    else:
        needs_mask = touches_diag

    @pl.when(jnp.logical_not(needs_mask))
    def _():
        # Interior tile: every column is a valid, off-diagonal contrast.
        d_sc[...] = d_scaled + jnp.sum(e, axis=1, keepdims=True)
        p_sc[...] = p_sc[...] + jnp.sum(jnp.where(pos_eq, s, 0.0),
                                        axis=1, keepdims=True)
        n_sc[...] = n_sc[...] + jnp.sum(pos_eq.astype(jnp.float32),
                                        axis=1, keepdims=True)

    @pl.when(needs_mask)
    def _():
        # Edge tile: exclude the diagonal and (possibly) padded contrast cols.
        row_ids = row_start + lax.broadcasted_iota(jnp.int32, (tm, tk), 0)
        col_ids = col_start + lax.broadcasted_iota(jnp.int32, (tm, tk), 1)
        valid = jnp.logical_and(row_ids != col_ids, col_ids < n_valid)
        pos = jnp.logical_and(pos_eq, valid)
        d_sc[...] = d_scaled + jnp.sum(jnp.where(valid, e, 0.0),
                                       axis=1, keepdims=True)
        p_sc[...] = p_sc[...] + jnp.sum(jnp.where(pos, s, 0.0),
                                        axis=1, keepdims=True)
        n_sc[...] = n_sc[...] + jnp.sum(pos.astype(jnp.float32),
                                        axis=1, keepdims=True)

    @pl.when(k == pl.num_programs(1) - 1)
    def _():
        # mean_log_prob_pos = sum(m*s)/sum(m) - row_max - log(sum_exp).
        # Rows with no positive pair (n == 0) give Inf/NaN, matching the torch
        # reference's division by zero; padded rows are sliced off outside.
        mlpp = (p_sc[...] * pl.reciprocal(n_sc[...], approx=False)
                - m_sc[...] - jnp.log(d_sc[...]))
        out_ref[...] = jnp.broadcast_to(-loss_scale * mlpp, (tm, 128))


def supcon_loss(features, labels, temperature=TEMPERATURE,
                base_temperature=BASE_TEMPERATURE, matmul_dtype=None):
    base_temperature = temperature if base_temperature is None else base_temperature
    B, H = features.shape
    assert labels.shape == (B,)

    # Normalize once in the wrapper (one fused XLA pass over data we pad
    # anyway); fold 1/temperature into the anchor operand.
    f32 = features.astype(jnp.float32)
    inv_norm = lax.rsqrt(jnp.maximum(jnp.sum(f32 * f32, axis=-1, keepdims=True),
                                     _EPS * _EPS))
    f_norm = f32 * inv_norm
    if matmul_dtype is None:
        # bf16 inputs stay bf16 on the MXU; f32 stays f32 (flip to bf16 via the
        # flag when compute-bound accuracy budget allows).
        matmul_dtype = features.dtype if features.dtype == jnp.bfloat16 else jnp.float32
    anchors = (f_norm * (1.0 / temperature)).astype(matmul_dtype)
    contrasts = f_norm.astype(matmul_dtype)

    H_pad = _round_up(H, 128)
    TM, TK, vmem_limit = _pick_tiles(B, H_pad, jnp.dtype(matmul_dtype).itemsize)
    B_pad = _round_up(B, max(TM, TK))

    a = jnp.pad(anchors, ((0, B_pad - B), (0, H_pad - H)))
    c = jnp.pad(contrasts, ((0, B_pad - B), (0, H_pad - H)))
    lab = jnp.pad(labels.astype(jnp.int32), (0, B_pad - B), constant_values=-1)
    lab_row = lab.reshape(B_pad, 1)
    lab_col = lab.reshape(1, B_pad)

    grid = (B_pad // TM, B_pad // TK)

    kernel = functools.partial(
        _supcon_kernel,
        tm=TM, tk=TK, n_valid=B, b_pad=B_pad,
        loss_scale=temperature / base_temperature,
    )

    per_row = pl.pallas_call(
        kernel,
        out_shape=jax.ShapeDtypeStruct((B_pad, 128), jnp.float32),
        grid_spec=pltpu.PrefetchScalarGridSpec(
            num_scalar_prefetch=0,
            grid=grid,
            in_specs=[
                pl.BlockSpec((TM, H_pad), lambda i, k: (i, 0)),   # anchors
                pl.BlockSpec((TK, H_pad), lambda i, k: (k, 0)),   # contrasts
                pl.BlockSpec((TM, 1), lambda i, k: (i, 0)),       # labels (rows)
                pl.BlockSpec((1, TK), lambda i, k: (0, k)),       # labels (cols)
            ],
            out_specs=pl.BlockSpec((TM, 128), lambda i, k: (i, 0)),
            scratch_shapes=[pltpu.VMEM((TM, 1), jnp.float32)] * 4,
        ),
        compiler_params=pltpu.CompilerParams(
            dimension_semantics=("parallel", "arbitrary"),
            vmem_limit_bytes=vmem_limit,
        ),
    )(a, c, lab_row, lab_col)

    # O(B) epilogue: mean over the real (un-padded) anchors.
    return jnp.mean(per_row[:B, 0])


def _reference_supcon(features, mask, temperature=TEMPERATURE,
                      base_temperature=BASE_TEMPERATURE):
    base_temperature = temperature if base_temperature is None else base_temperature
    f = features.astype(jnp.float32)
    B = f.shape[0]
    norm = jnp.sqrt(jnp.sum(f * f, axis=-1, keepdims=True))
    sim = (f @ f.T) / jnp.maximum(norm * norm.T, _EPS) / temperature
    logits = sim - jnp.max(sim, axis=1, keepdims=True)
    logits_mask = 1.0 - jnp.eye(B, dtype=jnp.float32)
    m = mask * logits_mask
    exp_logits = jnp.exp(logits) * logits_mask
    log_prob = logits - jnp.log(jnp.sum(exp_logits, axis=1, keepdims=True))
    mean_log_prob_pos = jnp.sum(m * log_prob, axis=1) / jnp.sum(m, axis=1)
    return jnp.mean(-(temperature / base_temperature) * mean_log_prob_pos)


if __name__ == "__main__":
    key = jax.random.PRNGKey(0)
    B, H = 8, 32

    features = jax.random.normal(key, (B, H), dtype=jnp.float32)
    # Deterministic labels: every class has exactly 2 members so each anchor
    # has at least one positive (avoids division by zero in mask.sum(1)).
    labels = jnp.array([0, 0, 1, 1, 2, 2, 3, 3], dtype=jnp.int32)

    loss = supcon_loss(features, labels)
    loss = jax.block_until_ready(loss)

    mask = (labels[:, None] == labels[None, :]).astype(jnp.float32)
    ref = _reference_supcon(features, mask)

    assert jnp.allclose(loss, ref, rtol=1e-4, atol=1e-4), (loss, ref)

    print("KERNEL_OK")
</pallas_src>

<mosaic_0001>
module attributes {stable_mosaic.version = 11 : i64} {
  func.func @_supcon_kernel(%arg0: i32, %arg1: i32, %arg2: memref<16x128xf32, #tpu.memory_space<vmem>>, %arg3: memref<16x128xf32, #tpu.memory_space<vmem>>, %arg4: memref<16x1xi32, #tpu.memory_space<vmem>>, %arg5: memref<1x16xi32, #tpu.memory_space<vmem>>, %arg6: memref<16x128xf32, #tpu.memory_space<vmem>>, %arg7: memref<16x1xf32, #tpu.memory_space<vmem>>, %arg8: memref<16x1xf32, #tpu.memory_space<vmem>>, %arg9: memref<16x1xf32, #tpu.memory_space<vmem>>, %arg10: memref<16x1xf32, #tpu.memory_space<vmem>>) attributes {dimension_semantics = [#tpu.dimension_semantics<parallel>, #tpu.dimension_semantics<arbitrary>], iteration_bounds = array<i64: 1, 1>, scalar_prefetch = 0 : i64, scratch_operands = 4 : i64, tpu.core_type = #tpu.core_type<tc>, window_params = [{transform_indices = @transform_0, window_bounds = array<i64: 16, 128>}, {transform_indices = @transform_1, window_bounds = array<i64: 16, 128>}, {transform_indices = @transform_2, window_bounds = array<i64: 16, 1>}, {transform_indices = @transform_3, window_bounds = array<i64: 1, 16>}, {transform_indices = @transform_4, window_bounds = array<i64: 16, 128>}]} {
    %c0_i32 = arith.constant 0 : i32
    %0 = arith.cmpi eq, %arg1, %c0_i32 : i32
    %1 = arith.extui %0 : i1 to i32
    %c0_i32_0 = arith.constant 0 : i32
    %2 = arith.cmpi ne, %1, %c0_i32_0 : i32
    scf.if %2 {
      %cst_23 = arith.constant 0xFF800000 : f32
      %40 = vector.broadcast %cst_23 : f32 to vector<16x1xf32>
      %c0_24 = arith.constant 0 : index
      %c0_25 = arith.constant 0 : index
      %41 = vector.load %arg7[%c0_24, %c0_25] : memref<16x1xf32, #tpu.memory_space<vmem>>, vector<16x1xf32>
      tpu.vector_store %arg7[%c0_24, %c0_25], %40 {strides = array<i32>} : memref<16x1xf32, #tpu.memory_space<vmem>>, vector<16x1xf32>,
      %cst_26 = arith.constant 0.000000e+00 : f32
      %42 = vector.broadcast %cst_26 : f32 to vector<16x1xf32>
      %c0_27 = arith.constant 0 : index
      %c0_28 = arith.constant 0 : index
      %43 = vector.load %arg8[%c0_27, %c0_28] : memref<16x1xf32, #tpu.memory_space<vmem>>, vector<16x1xf32>
      tpu.vector_store %arg8[%c0_27, %c0_28], %42 {strides = array<i32>} : memref<16x1xf32, #tpu.memory_space<vmem>>, vector<16x1xf32>,
      %cst_29 = arith.constant 0.000000e+00 : f32
      %44 = vector.broadcast %cst_29 : f32 to vector<16x1xf32>
      %c0_30 = arith.constant 0 : index
      %c0_31 = arith.constant 0 : index
      %45 = vector.load %arg9[%c0_30, %c0_31] : memref<16x1xf32, #tpu.memory_space<vmem>>, vector<16x1xf32>
      tpu.vector_store %arg9[%c0_30, %c0_31], %44 {strides = array<i32>} : memref<16x1xf32, #tpu.memory_space<vmem>>, vector<16x1xf32>,
      %cst_32 = arith.constant 0.000000e+00 : f32
      %46 = vector.broadcast %cst_32 : f32 to vector<16x1xf32>
      %c0_33 = arith.constant 0 : index
      %c0_34 = arith.constant 0 : index
      %47 = vector.load %arg10[%c0_33, %c0_34] : memref<16x1xf32, #tpu.memory_space<vmem>>, vector<16x1xf32>
      tpu.vector_store %arg10[%c0_33, %c0_34], %46 {strides = array<i32>} : memref<16x1xf32, #tpu.memory_space<vmem>>, vector<16x1xf32>,
    } else {
    }
    %c0 = arith.constant 0 : index
    %c0_1 = arith.constant 0 : index
    %3 = vector.load %arg2[%c0, %c0_1] : memref<16x128xf32, #tpu.memory_space<vmem>>, vector<16x128xf32>
    %c0_2 = arith.constant 0 : index
    %c0_3 = arith.constant 0 : index
    %4 = vector.load %arg3[%c0_2, %c0_3] : memref<16x128xf32, #tpu.memory_space<vmem>>, vector<16x128xf32>
    %cst = arith.constant dense<0.000000e+00> : vector<16x16xf32>
    %5 = tpu.matmul %3, %4, %cst {dimension_numbers = #tpu.dot_dimension_numbers<[1], [1], [0], [0], [0, 0, 1, 0], [], []>} : vector<16x128xf32>, vector<16x128xf32>, vector<16x16xf32> -> vector<16x16xf32>
    %c0_4 = arith.constant 0 : index
    %c0_5 = arith.constant 0 : index
    %6 = vector.load %arg7[%c0_4, %c0_5] : memref<16x1xf32, #tpu.memory_space<vmem>>, vector<16x1xf32>
    %cst_6 = arith.constant dense<0xFF800000> : vector<16xf32>
    %7 = vector.multi_reduction <maximumf>, %5, %cst_6 [1] : vector<16x16xf32> to vector<16xf32>
    %8 = vector.shape_cast %7 : vector<16xf32> to vector<16x1xf32>
    %9 = arith.maximumf %6, %8 : vector<16x1xf32>
    %10 = arith.subf %6, %9 : vector<16x1xf32>
    %11 = math.exp %10 : vector<16x1xf32>
    %12 = vector.broadcast %9 : vector<16x1xf32> to vector<16x16xf32>
    %13 = arith.subf %5, %12 : vector<16x16xf32>
    %14 = math.exp %13 : vector<16x16xf32>
    %c0_7 = arith.constant 0 : index
    %c0_8 = arith.constant 0 : index
    %15 = vector.load %arg8[%c0_7, %c0_8] : memref<16x1xf32, #tpu.memory_space<vmem>>, vector<16x1xf32>
    %16 = arith.mulf %15, %11 : vector<16x1xf32>
    %c0_9 = arith.constant 0 : index
    %c0_10 = arith.constant 0 : index
    %17 = vector.load %arg4[%c0_9, %c0_10] : memref<16x1xi32, #tpu.memory_space<vmem>>, vector<16x1xi32>
    %c0_11 = arith.constant 0 : index
    %c0_12 = arith.constant 0 : index
    %18 = vector.load %arg5[%c0_11, %c0_12] : memref<1x16xi32, #tpu.memory_space<vmem>>, vector<1x16xi32>
    %19 = vector.broadcast %17 : vector<16x1xi32> to vector<16x16xi32>
    %20 = vector.broadcast %18 : vector<1x16xi32> to vector<16x16xi32>
    %21 = arith.cmpi eq, %19, %20 : vector<16x16xi32>
    %c0_13 = arith.constant 0 : index
    %c0_14 = arith.constant 0 : index
    %22 = vector.load %arg7[%c0_13, %c0_14] : memref<16x1xf32, #tpu.memory_space<vmem>>, vector<16x1xf32>
    tpu.vector_store %arg7[%c0_13, %c0_14], %9 {strides = array<i32>} : memref<16x1xf32, #tpu.memory_space<vmem>>, vector<16x1xf32>,
    %c16_i32 = arith.constant 16 : i32
    %23 = arith.muli %arg0, %c16_i32 : i32
    %c16_i32_15 = arith.constant 16 : i32
    %24 = arith.muli %arg1, %c16_i32_15 : i32
    %c16_i32_16 = arith.constant 16 : i32
    %25 = arith.addi %24, %c16_i32_16 : i32
    %26 = arith.cmpi slt, %23, %25 : i32
    %c16_i32_17 = arith.constant 16 : i32
    %27 = arith.addi %23, %c16_i32_17 : i32
    %28 = arith.cmpi slt, %24, %27 : i32
    %29 = arith.andi %26, %28 : i1
    %c0_i32_18 = arith.constant 0 : i32
    %30 = arith.cmpi eq, %arg1, %c0_i32_18 : i32
    %31 = arith.ori %29, %30 : i1
    %true = arith.constant true
    %32 = arith.xori %31, %true : i1
    %33 = arith.extui %32 : i1 to i32
    %c0_i32_19 = arith.constant 0 : i32
    %34 = arith.cmpi ne, %33, %c0_i32_19 : i32
    scf.if %34 {
      %cst_23 = arith.constant dense<0.000000e+00> : vector<16xf32>
      %40 = vector.multi_reduction <add>, %14, %cst_23 [1] : vector<16x16xf32> to vector<16xf32>
      %41 = vector.shape_cast %40 : vector<16xf32> to vector<16x1xf32>
      %42 = arith.addf %16, %41 : vector<16x1xf32>
      %c0_24 = arith.constant 0 : index
      %c0_25 = arith.constant 0 : index
      %43 = vector.load %arg8[%c0_24, %c0_25] : memref<16x1xf32, #tpu.memory_space<vmem>>, vector<16x1xf32>
      tpu.vector_store %arg8[%c0_24, %c0_25], %42 {strides = array<i32>} : memref<16x1xf32, #tpu.memory_space<vmem>>, vector<16x1xf32>,
      %c0_26 = arith.constant 0 : index
      %c0_27 = arith.constant 0 : index
      %44 = vector.load %arg9[%c0_26, %c0_27] : memref<16x1xf32, #tpu.memory_space<vmem>>, vector<16x1xf32>
      %cst_28 = arith.constant 0.000000e+00 : f32
      %45 = vector.broadcast %cst_28 : f32 to vector<16x16xf32>
      %46 = arith.select %21, %5, %45 : vector<16x16xi1>, vector<16x16xf32>
      %cst_29 = arith.constant dense<0.000000e+00> : vector<16xf32>
      %47 = vector.multi_reduction <add>, %46, %cst_29 [1] : vector<16x16xf32> to vector<16xf32>
      %48 = vector.shape_cast %47 : vector<16xf32> to vector<16x1xf32>
      %49 = arith.addf %44, %48 : vector<16x1xf32>
      %c0_30 = arith.constant 0 : index
      %c0_31 = arith.constant 0 : index
      %50 = vector.load %arg9[%c0_30, %c0_31] : memref<16x1xf32, #tpu.memory_space<vmem>>, vector<16x1xf32>
      tpu.vector_store %arg9[%c0_30, %c0_31], %49 {strides = array<i32>} : memref<16x1xf32, #tpu.memory_space<vmem>>, vector<16x1xf32>,
      %c0_32 = arith.constant 0 : index
      %c0_33 = arith.constant 0 : index
      %51 = vector.load %arg10[%c0_32, %c0_33] : memref<16x1xf32, #tpu.memory_space<vmem>>, vector<16x1xf32>
      %52 = arith.extui %21 : vector<16x16xi1> to vector<16x16xi32>
      %53 = arith.sitofp %52 : vector<16x16xi32> to vector<16x16xf32>
      %cst_34 = arith.constant dense<0.000000e+00> : vector<16xf32>
      %54 = vector.multi_reduction <add>, %53, %cst_34 [1] : vector<16x16xf32> to vector<16xf32>
      %55 = vector.shape_cast %54 : vector<16xf32> to vector<16x1xf32>
      %56 = arith.addf %51, %55 : vector<16x1xf32>
      %c0_35 = arith.constant 0 : index
      %c0_36 = arith.constant 0 : index
      %57 = vector.load %arg10[%c0_35, %c0_36] : memref<16x1xf32, #tpu.memory_space<vmem>>, vector<16x1xf32>
      tpu.vector_store %arg10[%c0_35, %c0_36], %56 {strides = array<i32>} : memref<16x1xf32, #tpu.memory_space<vmem>>, vector<16x1xf32>,
    } else {
    }
    %35 = arith.extui %31 : i1 to i32
    %c0_i32_20 = arith.constant 0 : i32
    %36 = arith.cmpi ne, %35, %c0_i32_20 : i32
    scf.if %36 {
      %40 = tpu.iota {dimensions = array<i32: 0>} : vector<16x16xi32>
      %41 = vector.broadcast %23 : i32 to vector<16x16xi32>
      %42 = arith.addi %41, %40 : vector<16x16xi32>
      %43 = tpu.iota {dimensions = array<i32: 1>} : vector<16x16xi32>
      %44 = vector.broadcast %24 : i32 to vector<16x16xi32>
      %45 = arith.addi %44, %43 : vector<16x16xi32>
      %46 = arith.cmpi ne, %42, %45 : vector<16x16xi32>
      %c8_i32 = arith.constant 8 : i32
      %47 = vector.broadcast %c8_i32 : i32 to vector<16x16xi32>
      %48 = arith.cmpi slt, %45, %47 : vector<16x16xi32>
      %49 = arith.andi %46, %48 : vector<16x16xi1>
      %50 = arith.andi %21, %49 : vector<16x16xi1>
      %cst_23 = arith.constant 0.000000e+00 : f32
      %51 = vector.broadcast %cst_23 : f32 to vector<16x16xf32>
      %52 = arith.select %49, %14, %51 : vector<16x16xi1>, vector<16x16xf32>
      %cst_24 = arith.constant dense<0.000000e+00> : vector<16xf32>
      %53 = vector.multi_reduction <add>, %52, %cst_24 [1] : vector<16x16xf32> to vector<16xf32>
      %54 = vector.shape_cast %53 : vector<16xf32> to vector<16x1xf32>
      %55 = arith.addf %16, %54 : vector<16x1xf32>
      %c0_25 = arith.constant 0 : index
      %c0_26 = arith.constant 0 : index
      %56 = vector.load %arg8[%c0_25, %c0_26] : memref<16x1xf32, #tpu.memory_space<vmem>>, vector<16x1xf32>
      tpu.vector_store %arg8[%c0_25, %c0_26], %55 {strides = array<i32>} : memref<16x1xf32, #tpu.memory_space<vmem>>, vector<16x1xf32>,
      %c0_27 = arith.constant 0 : index
      %c0_28 = arith.constant 0 : index
      %57 = vector.load %arg9[%c0_27, %c0_28] : memref<16x1xf32, #tpu.memory_space<vmem>>, vector<16x1xf32>
      %cst_29 = arith.constant 0.000000e+00 : f32
      %58 = vector.broadcast %cst_29 : f32 to vector<16x16xf32>
      %59 = arith.select %50, %5, %58 : vector<16x16xi1>, vector<16x16xf32>
      %cst_30 = arith.constant dense<0.000000e+00> : vector<16xf32>
      %60 = vector.multi_reduction <add>, %59, %cst_30 [1] : vector<16x16xf32> to vector<16xf32>
      %61 = vector.shape_cast %60 : vector<16xf32> to vector<16x1xf32>
      %62 = arith.addf %57, %61 : vector<16x1xf32>
      %c0_31 = arith.constant 0 : index
      %c0_32 = arith.constant 0 : index
      %63 = vector.load %arg9[%c0_31, %c0_32] : memref<16x1xf32, #tpu.memory_space<vmem>>, vector<16x1xf32>
      tpu.vector_store %arg9[%c0_31, %c0_32], %62 {strides = array<i32>} : memref<16x1xf32, #tpu.memory_space<vmem>>, vector<16x1xf32>,
      %c0_33 = arith.constant 0 : index
      %c0_34 = arith.constant 0 : index
      %64 = vector.load %arg10[%c0_33, %c0_34] : memref<16x1xf32, #tpu.memory_space<vmem>>, vector<16x1xf32>
      %65 = arith.extui %50 : vector<16x16xi1> to vector<16x16xi32>
      %66 = arith.sitofp %65 : vector<16x16xi32> to vector<16x16xf32>
      %cst_35 = arith.constant dense<0.000000e+00> : vector<16xf32>
      %67 = vector.multi_reduction <add>, %66, %cst_35 [1] : vector<16x16xf32> to vector<16xf32>
      %68 = vector.shape_cast %67 : vector<16xf32> to vector<16x1xf32>
      %69 = arith.addf %64, %68 : vector<16x1xf32>
      %c0_36 = arith.constant 0 : index
      %c0_37 = arith.constant 0 : index
      %70 = vector.load %arg10[%c0_36, %c0_37] : memref<16x1xf32, #tpu.memory_space<vmem>>, vector<16x1xf32>
      tpu.vector_store %arg10[%c0_36, %c0_37], %69 {strides = array<i32>} : memref<16x1xf32, #tpu.memory_space<vmem>>, vector<16x1xf32>,
    } else {
    }
    %c0_i32_21 = arith.constant 0 : i32
    %37 = arith.cmpi eq, %arg1, %c0_i32_21 : i32
    %38 = arith.extui %37 : i1 to i32
    %c0_i32_22 = arith.constant 0 : i32
    %39 = arith.cmpi ne, %38, %c0_i32_22 : i32
    scf.if %39 {
      %c0_23 = arith.constant 0 : index
      %c0_24 = arith.constant 0 : index
      %40 = vector.load %arg9[%c0_23, %c0_24] : memref<16x1xf32, #tpu.memory_space<vmem>>, vector<16x1xf32>
      %c0_25 = arith.constant 0 : index
      %c0_26 = arith.constant 0 : index
      %41 = vector.load %arg10[%c0_25, %c0_26] : memref<16x1xf32, #tpu.memory_space<vmem>>, vector<16x1xf32>
      %42 = tpu.reciprocal %41 : vector<16x1xf32> -> vector<16x1xf32>
      %43 = arith.mulf %40, %42 : vector<16x1xf32>
      %c0_27 = arith.constant 0 : index
      %c0_28 = arith.constant 0 : index
      %44 = vector.load %arg7[%c0_27, %c0_28] : memref<16x1xf32, #tpu.memory_space<vmem>>, vector<16x1xf32>
      %45 = arith.subf %43, %44 : vector<16x1xf32>
      %c0_29 = arith.constant 0 : index
      %c0_30 = arith.constant 0 : index
      %46 = vector.load %arg8[%c0_29, %c0_30] : memref<16x1xf32, #tpu.memory_space<vmem>>, vector<16x1xf32>
      %47 = math.log %46 : vector<16x1xf32>
      %48 = arith.subf %45, %47 : vector<16x1xf32>
      %cst_31 = arith.constant -1.000000e+00 : f32
      %49 = vector.broadcast %cst_31 : f32 to vector<16x1xf32>
      %50 = arith.mulf %49, %48 : vector<16x1xf32>
      %51 = vector.shape_cast %50 : vector<16x1xf32> to vector<16x1xf32>
      %52 = vector.broadcast %51 : vector<16x1xf32> to vector<16x128xf32>
      %c0_32 = arith.constant 0 : index
      %c0_33 = arith.constant 0 : index
      %53 = vector.load %arg6[%c0_32, %c0_33] : memref<16x128xf32, #tpu.memory_space<vmem>>, vector<16x128xf32>
      tpu.vector_store %arg6[%c0_32, %c0_33], %52 {strides = array<i32>} : memref<16x128xf32, #tpu.memory_space<vmem>>, vector<16x128xf32>,
    } else {
    }
    return
  }
  func.func @transform_0(%arg0: i32, %arg1: i32) -> (i32, i32) {
    %c0_i32 = arith.constant 0 : i32
    %c0_i32_0 = arith.constant 0 : i32
    return %arg0, %c0_i32 : i32, i32
  }
  func.func @transform_1(%arg0: i32, %arg1: i32) -> (i32, i32) {
    %c0_i32 = arith.constant 0 : i32
    %c0_i32_0 = arith.constant 0 : i32
    return %arg1, %c0_i32 : i32, i32
  }
  func.func @transform_2(%arg0: i32, %arg1: i32) -> (i32, i32) {
    %c0_i32 = arith.constant 0 : i32
    %c0_i32_0 = arith.constant 0 : i32
    return %arg0, %c0_i32 : i32, i32
  }
  func.func @transform_3(%arg0: i32, %arg1: i32) -> (i32, i32) {
    %c0_i32 = arith.constant 0 : i32
    %c0_i32_0 = arith.constant 0 : i32
    return %c0_i32, %arg1 : i32, i32
  }
  func.func @transform_4(%arg0: i32, %arg1: i32) -> (i32, i32) {
    %c0_i32 = arith.constant 0 : i32
    %c0_i32_0 = arith.constant 0 : i32
    return %arg0, %c0_i32 : i32, i32
  }
}

</mosaic_0001>

<bundles_post_ra>
// kernel: tpu_custom_call.1
= control target key start
LH: loop header
LB: loop body
LE: loop exit
PB: predicated region body
PF: predicated region fallthrough
CT: control target
= control target key end

     0   :  { %9 = vsyncpa [#allocation7], 0  ;;  %s577_s0 = inlined_call_operand.vmem [shape: f32[16,128], index: 0, kind: input, shape index: {}]   ;;  %s578_s1 = inlined_call_operand.hbm [shape: f32[16,128], index: 1, kind: input, shape index: {}]   ;;  %s579_s2 = inlined_call_operand.vmem [shape: s32[16,1], index: 2, kind: input, shape index: {}]   ;;  %s580_s3 = inlined_call_operand.vmem [shape: s32[1,16], index: 3, kind: input, shape index: {}]   ;;  %s581_s4 = inlined_call_operand.hbm [shape: f32[16,128], index: 4, kind: output, shape index: {}]  }
   0x1   :  { %10 = vsyncpa [#allocation8], 0  ;;  %s440_s15 = smov [#allocation6]   ;;  %s392_s19 = scalar_lea.hbm %s578_s1, 256 }
   0x2   :  { %s18_s16 = sshll.u32 %s440_s15, 4  ;;  %p393_p0 = scmp.ne.s32.totalorder %s578_s1, %s392_s19  ;;  %s19_s16 = int_to_ptr.vmem [resolvable:$true] %s18_s16 }
   0x3   :  { %p396_p1 = scmp.lt.u32.totalorder %s392_s19, %s578_s1 }
   0x5   :  { %p398_p2 = pnand %p396_p1, %p393_p0 }
   0x7   :  { %401 = shalt.err (!%p398_p2)
}
   0x8   :  { %s402_s24 = scalar_lea.vmem %s19_s16, 256  ;;  %p407_p4 = scmp.lt.s32.totalorder %s19_s16, %s19_s16 }
   0x9   :  { %p403_p3 = scmp.ne.s32.totalorder %s19_s16, %s402_s24  ;;  %p408_p5 = scmp.lt.s32.totalorder %s402_s24, %s402_s24 }
   0xb   :  { %p409_p6 = por %p408_p5, %p407_p4 }
   0xd   :  { %p410_p7 = pnand %p409_p6, %p403_p3 }
   0xf   :  { %413 = shalt.err (!%p410_p7)
}
  0x10   :  { %s441_s25 = smov 128   ;;  %s442_s26 = smov 8  }
  0x11   :  { %24 = dma.hbm_to_vmem [thread:$0]  %s578_s1, 256, %s19_s16, [#allocation7], %s441_s25, %s441_s25, %s442_s26  }
  0x12   :  { %436 = dma.done.wait [#allocation7], 256  }
  0x13   :  { %437 = vsyncadd [#allocation7], 4294967040  ;;  %v47_v0 = vld [vmem:[#allocation6] sm:$0xff]  ;;  %v48_v1 = vld [vmem:[#allocation6 + $0x8] sm:$0xff]  ;;  %v443_v5 = vmov 0   ;;  %vm36_vm0 = vcmask 7168   ;;  %v191_v15 = vlaneseq }
  0x14   :  { %v45_v2 = vld [vmem:[%s577_s0] sm:$0xff]  ;;  %v363_v3 = vpack.c.bf16 %v48_v1, %v47_v0  ;;  %v46_v4 = vld [vmem:[%s577_s0 + $0x8] sm:$0xff]  ;;  %375 = vset.pattern.permute.xlu0 %v443_v5  ;;  %374 = vset.pattern.permute.xlu1 %v443_v5  ;;  %v444_v6 = vmov -inf   ;;  %vm126_vm1 = vcmask 130048   ;;  %v445_v12 = vmov 0.0  }
  0x15   :  { %360 = vmatprep.mubr.f32.mxu0 %v45_v2  ;;  %37 = vst.msk [vmem:[#allocation2] sm:$0xff] %vm36_vm0, %v444_v6  ;;  %38 = vst.msk [vmem:[#allocation2 + $0x8] sm:$0xff] %vm36_vm0, %v444_v6  ;;  %v161_v11 = vld [vmem:[%s579_s2] sm:$0xff]  ;;  %v192_v20 = vshrl.u32 %v191_v15, 7  ;;  %v198_v21 = vand.u32 127, %v191_v15  ;;  %v162_v24 = vld [vmem:[%s579_s2 + $0x8] sm:$0xff] }
  0x16   :  { %364 = vmatprep.subr.bf16.mxu0 %v363_v3  ;;  %39 = vst.msk [vmem:[#allocation3] sm:$0xff] %vm36_vm0, %v445_v12  ;;  %40 = vst.msk [vmem:[#allocation3 + $0x8] sm:$0xff] %vm36_vm0, %v445_v12  ;;  %v347_v25 = vld [vmem:[%s580_s3] ss:$0 sm:$0xff]  ;;  %s446_s2 = smov [#allocation9]  }
  0x17   :  { %366 = vmatpush3.bf16.xpose.msra.mxu0 %v363_v3  ;;  %41 = vst.msk [vmem:[#allocation4] sm:$0xff] %vm36_vm0, %v445_v12  ;;  %42 = vst.msk [vmem:[#allocation4 + $0x8] sm:$0xff] %vm36_vm0, %v445_v12  ;;  %vm201_vm2 = vcmp.ne.s32.totalorder %v192_v20, %v198_v21  ;;  %vm203_vm3 = vcmp.lt.s32.totalorder %v198_v21, 8  ;;  %v193_v33 = vadd.s32 8, %v192_v20  ;;  %s335_s3 = sshll.u32 %s446_s2, 4  ;;  %s336_s3 = int_to_ptr.vmem [resolvable:$true] %s335_s3 }
  0x18   :  { %43 = vst.msk [vmem:[#allocation5] sm:$0xff] %vm36_vm0, %v445_v12  ;;  %44 = vst.msk [vmem:[#allocation5 + $0x8] sm:$0xff] %vm36_vm0, %v445_v12  ;;  %s414_s11 = scalar_lea.vmem %s336_s3, 256  ;;  %p419_p9 = scmp.lt.s32.totalorder %s336_s3, %s336_s3 }
  0x19   :  { %vm521_vm4 = vmand %vm201_vm2, %vm203_vm3  ;;  %vm202_vm7 = vcmp.ne.s32.totalorder %v193_v33, %v198_v21  ;;  %p415_p8 = scmp.ne.s32.totalorder %s336_s3, %s414_s11  ;;  %p420_p10 = scmp.lt.s32.totalorder %s414_s11, %s414_s11 }
  0x1a   :  { %vm205_vm8 = vmand %vm202_vm7, %vm203_vm3 }
  0x1b   :  { %p421_p11 = por %p420_p10, %p419_p9 }
  0x1c   :  { %v124_v13 = vld [vmem:[#allocation2] sm:$0xff]  ;;  %v125_v17 = vld [vmem:[#allocation2 + $0x8] sm:$0xff] }
  0x1d   :  { %v157_v61 = vld [vmem:[#allocation3] sm:$0xff]  ;;  %v158_v1 = vld [vmem:[#allocation3 + $0x8] sm:$0xff]  ;;  %p422_p12 = pnand %p421_p11, %p415_p8 }
  0x1e   :  { %361 = vmatmul.mubr.f32.vlgmr.msra.gmra.mrb[0].mxu0 %v46_v4 }
  0x1f   :  { %v234_v52 = vld [vmem:[#allocation5] sm:$0xff]  ;;  %v235_v57 = vld [vmem:[#allocation5 + $0x8] sm:$0xff] }
  0xf1   :  { %v495_v7 = vpop.f32.mrb[0].mxu0 }
  0xf2   :  { %v497_v8 = vpop.f32.mrb[1].mxu0  ;;  %v130_v10 = vsel %vm126_vm1, %v495_v7, -inf }
  0xf3   :  { %v127_v9 = vsel %vm126_vm1, %v497_v8, -inf }
  0xf4   :  { %128 = vmax.xlane.f32.xlu0 %v127_v9 }
  0xf8   :  { %131 = vmax.xlane.f32.xlu0 %v130_v10 }
 0x10e   :  { %165 = vperm.xlu0 %375, %v161_v11   ;;  %v221_v11 = vld [vmem:[#allocation4 + $0x8] sm:$0xff] }
 0x181   :  { %v129_v14 = vpop.xlane.xlu0 %128 }
 0x182   :  { %v133_v16 = vmax.f32 %v124_v13, %v129_v14 }
 0x184   :  { %v135_v18 = vsub.f32 %v124_v13, %v133_v16  ;;  %177 = vst.msk [vmem:[#allocation2] sm:$0xff] %vm36_vm0, %v133_v16  ;;  %143 = vperm.xlu1 %374, %v133_v16  }
 0x185   :  { %v132_v19 = vpop.xlane.xlu0 %131 }
 0x186   :  { %v134_v22 = vmax.f32 %v125_v17, %v132_v19  ;;  %v137_v55 = vmul.f32 1.442695, %v135_v18 }
 0x188   :  { %v136_v23 = vsub.f32 %v125_v17, %v134_v22  ;;  %178 = vst.msk [vmem:[#allocation2 + $0x8] sm:$0xff] %vm36_vm0, %v134_v22  ;;  %148 = vperm.xlu1 %374, %v134_v22  }
 0x18a   :  { %v139_v56 = vmul.f32 1.442695, %v136_v23 }
 0x18b   :  { %v304_v19 = vld [vmem:[#allocation2] sm:$0xff] }
 0x18c   :  { %168 = vperm.xlu1 %374, %v162_v24  }
 0x18d   :  { %v166_v27 = vpop.permute.xlu0 %165 }
 0x18e   :  { %vm174_vm5 = vcmp.eq.s32.totalorder %v166_v27, %v347_v25 }
 0x18f   :  { %vm527_vm6 = vmand %vm174_vm5, %vm521_vm4  ;;  %v305_v27 = vld [vmem:[#allocation2 + $0x8] sm:$0xff] }
 0x190   :  { %v222_v29 = vsel %vm527_vm6, %v497_v8, 0.0  ;;  %v348_v30 = vsel %vm527_vm6, 1.0, %v445_v12 }
 0x191   :  { %v240_v31 = vsel %vm126_vm1, %v348_v30, 0.0  ;;  %v224_v49 = vsel %vm126_vm1, %v222_v29, 0.0 }
 0x1b0   :  { %241 = vadd.xlane.f32.xlu1 %v240_v31 }
 0x203   :  { %v144_v32 = vpop.permute.xlu1 %143 }
 0x204   :  { %v151_v34 = vsub.f32 %v497_v8, %v144_v32 }
 0x206   :  { %v153_v35 = vmul.f32 1.442695, %v151_v34 }
 0x207   :  { %v149_v36 = vpop.permute.xlu1 %148 }
 0x208   :  { %376 = vpow2.f32 %v153_v35  ;;  %v152_v37 = vsub.f32 %v495_v7, %v149_v36 }
 0x20a   :  { %v155_v38 = vmul.f32 1.442695, %v152_v37 }
 0x20b   :  { %v169_v39 = vpop.permute.xlu1 %168 }
 0x20c   :  { %378 = vpow2.f32 %v155_v38  ;;  %vm175_vm9 = vcmp.eq.s32.totalorder %v169_v39, %v347_v25 }
 0x20d   :  { %vm540_vm10 = vmand %vm175_vm9, %vm205_vm8  ;;  %380 = vpow2.f32 %v137_v55 }
 0x20e   :  { %v349_v41 = vsel %vm540_vm10, 1.0, %v445_v12  ;;  %v223_v50 = vsel %vm540_vm10, %v495_v7, 0.0  ;;  %382 = vpow2.f32 %v139_v56  ;;  %v220_v7 = vld [vmem:[#allocation4] sm:$0xff] }
 0x20f   :  { %v243_v42 = vsel %vm126_vm1, %v349_v41, 0.0  ;;  %v227_v51 = vsel %vm126_vm1, %v223_v50, 0.0 }
 0x210   :  { %244 = vadd.xlane.f32.xlu1 %v243_v42 }
 0x212   :  { %v377_v43 = vpop.eup %376 }
 0x213   :  { %v208_v44 = vsel %vm521_vm4, %v377_v43, 0.0 }
 0x214   :  { %v210_v45 = vsel %vm126_vm1, %v208_v44, 0.0 }
 0x215   :  { %211 = vadd.xlane.f32.xlu0 %v210_v45 }
 0x216   :  { %v379_v46 = vpop.eup %378 }
 0x217   :  { %v209_v47 = vsel %vm205_vm8, %v379_v46, 0.0  ;;  %v381_v59 = vpop.eup %380 }
 0x218   :  { %v213_v48 = vsel %vm126_vm1, %v209_v47, 0.0  ;;  %v159_v62 = vmul.f32 %v381_v59, %v157_v61  ;;  %v383_v63 = vpop.eup %382 }
 0x219   :  { %214 = vadd.xlane.f32.xlu1 %v213_v48  ;;  %v160_v3 = vmul.f32 %v383_v63, %v158_v1 }
 0x21d   :  { %225 = vadd.xlane.f32.xlu1 %v224_v49 }
 0x221   :  { %228 = vadd.xlane.f32.xlu1 %v227_v51 }
 0x23d   :  { %v242_v53 = vpop.xlane.xlu1 %241 }
 0x23e   :  { %v246_v54 = vadd.f32 %v242_v53, %v234_v52 }
 0x240   :  { %248 = vst.msk [vmem:[#allocation5] sm:$0xff] %vm36_vm0, %v246_v54 }
 0x247   :  { %v298_v4 = vld [vmem:[#allocation5] sm:$0xff] }
 0x248   :  { %384 = vrcp.f32 %v298_v4 }
 0x252   :  { %v385_v16 = vpop.eup %384 }
 0x29d   :  { %v245_v58 = vpop.xlane.xlu1 %244 }
 0x29e   :  { %v247_v60 = vadd.f32 %v245_v58, %v235_v57 }
 0x2a0   :  { %249 = vst.msk [vmem:[#allocation5 + $0x8] sm:$0xff] %vm36_vm0, %v247_v60 }
 0x2a2   :  { %v212_v0 = vpop.xlane.xlu0 %211 }
 0x2a3   :  { %v216_v2 = vadd.f32 %v212_v0, %v159_v62 }
 0x2a5   :  { %218 = vst.msk [vmem:[#allocation3] sm:$0xff] %vm36_vm0, %v216_v2 }
 0x2a6   :  { %v215_v5 = vpop.xlane.xlu1 %214 }
 0x2a7   :  { %v217_v6 = vadd.f32 %v215_v5, %v160_v3  ;;  %v299_v10 = vld [vmem:[#allocation5 + $0x8] sm:$0xff] }
 0x2a9   :  { %219 = vst.msk [vmem:[#allocation3 + $0x8] sm:$0xff] %vm36_vm0, %v217_v6 }
 0x2aa   :  { %v226_v8 = vpop.xlane.xlu1 %225 }
 0x2ab   :  { %v230_v9 = vadd.f32 %v226_v8, %v220_v7 }
 0x2ac   :  { %v308_v12 = vld [vmem:[#allocation3] sm:$0xff] }
 0x2ad   :  { %232 = vst.msk [vmem:[#allocation4] sm:$0xff] %vm36_vm0, %v230_v9  ;;  %386 = vlog2.f32 %v308_v12 }
 0x2ae   :  { %v229_v13 = vpop.xlane.xlu1 %228  ;;  %388 = vrcp.f32 %v299_v10 }
 0x2af   :  { %v231_v14 = vadd.f32 %v229_v13, %v221_v11 }
 0x2b0   :  { %v309_v15 = vld [vmem:[#allocation3 + $0x8] sm:$0xff] }
 0x2b1   :  { %233 = vst.msk [vmem:[#allocation4 + $0x8] sm:$0xff] %vm36_vm0, %v231_v14  ;;  %390 = vlog2.f32 %v309_v15 }
 0x2b4   :  { %v296_v17 = vld [vmem:[#allocation4] sm:$0xff] }
 0x2b5   :  { %v302_v18 = vmul.f32 %v385_v16, %v296_v17 }
 0x2b7   :  { %v387_v20 = vpop.eup %386  ;;  %v306_v21 = vsub.f32 %v302_v18, %v304_v19 }
 0x2b8   :  { %v389_v22 = vpop.eup %388  ;;  %v311_v23 = vmul.f32 0.6931472, %v387_v20  ;;  %v297_v24 = vld [vmem:[#allocation4 + $0x8] sm:$0xff] }
 0x2b9   :  { %v303_v25 = vmul.f32 %v389_v22, %v297_v24 }
 0x2ba   :  { %v314_v26 = vsub.f32 %v306_v21, %v311_v23 }
 0x2bb   :  { %v391_v28 = vpop.eup %390  ;;  %v307_v29 = vsub.f32 %v303_v25, %v305_v27 }
 0x2bc   :  { %v316_v30 = vmul.f32 -1.0, %v314_v26  ;;  %v313_v31 = vmul.f32 0.6931472, %v391_v28 }
 0x2be   :  { %320 = vperm.xlu1 %374, %v316_v30   ;;  %v315_v32 = vsub.f32 %v307_v29, %v313_v31 }
 0x2c0   :  { %v317_v33 = vmul.f32 -1.0, %v315_v32 }
 0x2c2   :  { %325 = vperm.xlu1 %374, %v317_v33  }
 0x33d   :  { %v321_v34 = vpop.permute.xlu1 %320 }
 0x33e   :  { %328 = vst [vmem:[#allocation9] sm:$0xff] %v321_v34 }
 0x341   :  { %v326_v35 = vpop.permute.xlu1 %325 }
 0x342   :  { %329 = vst [vmem:[#allocation9 + $0x8] sm:$0xff] %v326_v35 }
 0x343   :  { %425 = shalt.err (!%p422_p12)
}
 0x344   :  { %s426_s14 = scalar_lea.hbm %s581_s4, 256 }
 0x345   :  { %p427_p13 = scmp.ne.s32.totalorder %s581_s4, %s426_s14  ;;  %p430_p0 = scmp.lt.u32.totalorder %s426_s14, %s581_s4 }
 0x347   :  { %p432_p1 = pnand %p430_p0, %p427_p13 }
 0x349   :  { %435 = shalt.err (!%p432_p1)
}
 0x34a   :  { %341 = dma.vmem_to_hbm [thread:$0]  %s336_s3, 256, %s581_s4, [#allocation8], %s441_s25, %s441_s25, %s442_s26  }
 0x34b   :  { %438 = dma.done.wait [#allocation8], 256  }
 0x34c   :  { %439 = vsyncadd [#allocation8], 4294967040 }
 0x34d   :  { %345 = vsyncpa [#allocation7], 1 }
 0x34e   :  { %346 = vsyncpa [#allocation8], 1 }

</bundles_post_ra>
